<compile_context>
chip_gen: v7x
topology: tpu7x:2x2x1
jax: 0.10.0
libtpu: 0.0.40
codegen_flags: <defaults>
</compile_context>

<pallas_src>
import jax
import jax.numpy as jnp
from jax.experimental import pallas as pl
from jax.experimental.pallas import tpu as pltpu


def _round_up(x, m):
    return (x + m - 1) // m * m


def _num_tensorcores():
    """Best-effort detection of TensorCores per device (v7x / megacore -> 2)."""
    try:
        d = jax.devices()[0]
        kind = str(getattr(d, "device_kind", "")).lower()
        if "v7" in kind or "7x" in kind:
            return 2
        nc = getattr(d, "num_cores", None)
        if nc:
            return int(nc)
    except Exception:
        pass
    return 1


# ----------------------------- Pallas kernel ------------------------------- #

def _make_fused_gru_kernel(num_layers, seq_len, num_features, hidden_size):
    """Fused forward: all GRU layers/timesteps + BN + fc + fc2 in one body."""
    H = hidden_size
    T = seq_len
    F = num_features

    def kernel(*refs):
        # refs = [x, (W_i_cat, W_h_cat, b_cat) per layer...,
        #         scale_shift, w1, b1, w2, b2, out]
        x_ref = refs[0]
        o_ref = refs[-1]
        params = refs[1:-1]
        layer_refs = [params[3 * l: 3 * l + 3] for l in range(num_layers)]
        ss_ref, w1_ref, b1_ref, w2_ref, b2_ref = params[3 * num_layers:]

        tb = x_ref.shape[0]
        x_flat = x_ref[...]                                   # (tb, T*F) f32
        # Per-timestep inputs for layer 0 (static lane slices, cheap).
        xs = [x_flat[:, t * F:(t + 1) * F] for t in range(T)]

        h = None
        for l in range(num_layers):
            wi_ref, wh_ref, b_ref = layer_refs[l]
            # One batched input projection for ALL timesteps of this layer;
            # input bias folded in here.  Rows [t*tb:(t+1)*tb] = timestep t.
            X = jnp.concatenate(xs, axis=0)                   # (tb*T, in_dim)
            proj = (jnp.dot(X.astype(jnp.bfloat16), wi_ref[...],
                            preferred_element_type=jnp.float32)
                    + b_ref[0:1, :])                          # (tb*T, 3H)
            wh = wh_ref[...]                                  # (H, 3H) bf16
            b_h = jnp.broadcast_to(b_ref[1:2, :], (tb, 3 * H))  # hoisted
            h = jnp.zeros((tb, H), jnp.float32)
            outs = []
            # Sequential recurrence: one small (tb,H)x(H,3H) matmul per step.
            for t in range(T):
                p_t = proj[t * tb:(t + 1) * tb, :]            # static slice
                hh = jnp.dot(h.astype(jnp.bfloat16), wh,
                             preferred_element_type=jnp.float32) + b_h
                rz = jax.nn.sigmoid(p_t[:, :2 * H] + hh[:, :2 * H])
                r = rz[:, :H]
                z = rz[:, H:2 * H]
                n = jnp.tanh(p_t[:, 2 * H:] + r * hh[:, 2 * H:])
                h = (1.0 - z) * n + z * h
                outs.append(h)
            xs = outs
            # TODO(synk): inter-layer dropout (train mode only) omitted;
            #             identity in eval mode.

        # Last timestep of top layer -> folded eval-mode BatchNorm1d -> fc -> fc2.
        y = h * ss_ref[0:1, :] + ss_ref[1:2, :]
        y = jnp.dot(y.astype(jnp.bfloat16), w1_ref[...],
                    preferred_element_type=jnp.float32) + b1_ref[...]
        o_ref[...] = (jnp.dot(y.astype(jnp.bfloat16), w2_ref[...],
                              preferred_element_type=jnp.float32) + b2_ref[...])

    return kernel


# ----------------------------- Model container ----------------------------- #

class NIDSGRUPallas:
    """Eval-mode NIDSGRU forward as a single fused Pallas TPU kernel."""

    def __init__(self, num_features, hidden_size, num_layers, num_classes,
                 use_bn=False, dropout=0.5, eps=1e-5, key=None):
        if key is None:
            key = jax.random.PRNGKey(42)
        self.num_features = num_features
        self.hidden_size = hidden_size
        self.num_layers = num_layers
        self.num_classes = num_classes
        self.use_bn = use_bn
        self._num_tc = _num_tensorcores()
        H = hidden_size
        bound = float(1.0 / jnp.sqrt(jnp.float32(H)))

        def unif(k, shape, b):
            return jax.random.uniform(k, shape, jnp.float32, -b, b)

        # --- GRU layers: concatenated gate weights [r|z|n], bf16 for the MXU ---
        self._gru_packed = []   # (W_i_cat bf16, W_h_cat bf16, b_cat f32 (2,3H))
        self._gru_ref = []      # f32 copies of the bf16-rounded weights (reference)
        in_dim = num_features
        for _ in range(num_layers):
            key, *ks = jax.random.split(key, 13)
            w_ir = unif(ks[0], (in_dim, H), bound)
            w_iz = unif(ks[1], (in_dim, H), bound)
            w_in = unif(ks[2], (in_dim, H), bound)
            w_hr = unif(ks[3], (H, H), bound)
            w_hz = unif(ks[4], (H, H), bound)
            w_hn = unif(ks[5], (H, H), bound)
            b_ir = unif(ks[6], (1, H), bound)
            b_iz = unif(ks[7], (1, H), bound)
            b_in = unif(ks[8], (1, H), bound)
            b_hr = unif(ks[9], (1, H), bound)
            b_hz = unif(ks[10], (1, H), bound)
            b_hn = unif(ks[11], (1, H), bound)
            w_i_cat = jnp.concatenate([w_ir, w_iz, w_in], axis=1)   # (in, 3H)
            w_h_cat = jnp.concatenate([w_hr, w_hz, w_hn], axis=1)   # (H, 3H)
            b_cat = jnp.concatenate(
                [jnp.concatenate([b_ir, b_iz, b_in], axis=1),
                 jnp.concatenate([b_hr, b_hz, b_hn], axis=1)], axis=0)  # (2, 3H)
            wi_bf = w_i_cat.astype(jnp.bfloat16)
            wh_bf = w_h_cat.astype(jnp.bfloat16)
            self._gru_packed.append((wi_bf, wh_bf, b_cat))
            self._gru_ref.append((wi_bf.astype(jnp.float32),
                                  wh_bf.astype(jnp.float32), b_cat))
            in_dim = H

        # --- BatchNorm1d (eval mode) folded into scale/shift, stacked (2, H) ---
        if use_bn:
            key, kg, kb, km, kv = jax.random.split(key, 5)
            gamma = 1.0 + 0.1 * jax.random.normal(kg, (H,), jnp.float32)
            beta = 0.1 * jax.random.normal(kb, (H,), jnp.float32)
            rmean = 0.1 * jax.random.normal(km, (H,), jnp.float32)
            rvar = 1.0 + 0.1 * jax.random.uniform(kv, (H,), jnp.float32)
            scale = gamma / jnp.sqrt(rvar + eps)
            shift = beta - rmean * scale
        else:
            scale = jnp.ones((H,), jnp.float32)
            shift = jnp.zeros((H,), jnp.float32)
        self.scale_shift = jnp.stack([scale, shift], axis=0)        # (2, H)

        # --- fc (H -> 100) and fc2 (100 -> num_classes), lane-dense padding ---
        FC = 100
        self._FCP = _round_up(FC, 128)
        self._CP = _round_up(num_classes, 128)
        key, kw1, kb1, kw2, kb2 = jax.random.split(key, 5)
        b1s = float(1.0 / jnp.sqrt(jnp.float32(H)))
        b2s = float(1.0 / jnp.sqrt(jnp.float32(FC)))
        w1 = unif(kw1, (H, FC), b1s)
        b1 = unif(kb1, (FC,), b1s)
        w2 = unif(kw2, (FC, num_classes), b2s)
        b2 = unif(kb2, (num_classes,), b2s)
        w1p = jnp.zeros((H, self._FCP), jnp.float32).at[:, :FC].set(w1)
        w2p = jnp.zeros((self._FCP, self._CP), jnp.float32) \
                 .at[:FC, :num_classes].set(w2)
        self.w1p = w1p.astype(jnp.bfloat16)
        self.w2p = w2p.astype(jnp.bfloat16)
        self._w1_ref = self.w1p.astype(jnp.float32)
        self._w2_ref = self.w2p.astype(jnp.float32)
        self.b1p = jnp.zeros((1, self._FCP), jnp.float32).at[:, :FC].set(b1)
        self.b2p = jnp.zeros((1, self._CP), jnp.float32) \
                      .at[:, :num_classes].set(b2)

        flat = []
        for lp in self._gru_packed:
            flat.extend(lp)
        flat.extend([self.scale_shift, self.w1p, self.b1p, self.w2p, self.b2p])
        self._flat = tuple(flat)

        # Single jit for the whole forward (one dispatch, one kernel launch).
        self._jitted = jax.jit(self._forward_impl)

    # ------------------------------ forward -------------------------------- #

    def _forward_impl(self, x, flat):
        B, T, F = x.shape

        # Batch tiling: multi-TensorCore chips (v7x / megacore) want >=2 grid
        # steps so both cores work; single-TC chips want as few steps as possible.
        b8 = _round_up(max(B, 1), 8)
        if self._num_tc > 1 and b8 >= 16:
            tb = min(512, _round_up(-(-b8 // self._num_tc), 8))
        else:
            tb = min(b8, 1024)
        b_pad = _round_up(b8, tb)

        # Flatten time into the feature axis: contiguous lane-dense rows,
        # no (8,128) tile blow-up from a (tb, T, F) block.
        x_flat = jnp.pad(x, ((0, b_pad - B), (0, 0), (0, 0))).reshape(b_pad, T * F)

        kernel = _make_fused_gru_kernel(self.num_layers, T, F, self.hidden_size)

        const = lambda i: (0, 0)            # resident weights: constant block idx
        in_specs = [pl.BlockSpec((tb, T * F), lambda i: (i, 0))]
        in_specs += [pl.BlockSpec(p.shape, const) for p in flat]
        out_spec = pl.BlockSpec((tb, self._CP), lambda i: (i, 0))

        out = pl.pallas_call(
            kernel,
            out_shape=jax.ShapeDtypeStruct((b_pad, self._CP), jnp.float32),
            grid=(b_pad // tb,),
            in_specs=in_specs,
            out_specs=out_spec,
            compiler_params=pltpu.CompilerParams(
                dimension_semantics=("parallel",)),
        )(x_flat, *flat)
        return out[:B, :self.num_classes]

    def __call__(self, x):
        return self._jitted(x, self._flat)

    # ------------------------------ reference ------------------------------ #

    def reference(self, x):
        """Pure-JAX eval-mode reference (f32 activations, same bf16-rounded weights)."""
        B, T, _ = x.shape
        H = self.hidden_size
        hs = [jnp.zeros((B, H), jnp.float32) for _ in range(self.num_layers)]
        for t in range(T):
            inp = x[:, t, :]
            for l in range(self.num_layers):
                wi, wh, b = self._gru_ref[l]
                gi = inp @ wi + b[0:1, :]
                gh = hs[l] @ wh + b[1:2, :]
                r = jax.nn.sigmoid(gi[:, :H] + gh[:, :H])
                z = jax.nn.sigmoid(gi[:, H:2 * H] + gh[:, H:2 * H])
                n = jnp.tanh(gi[:, 2 * H:] + r * gh[:, 2 * H:])
                hs[l] = (1.0 - z) * n + z * hs[l]
                inp = hs[l]
        y = hs[-1] * self.scale_shift[0:1, :] + self.scale_shift[1:2, :]
        y = y @ self._w1_ref + self.b1p
        y = y @ self._w2_ref + self.b2p
        return y[:, :self.num_classes]


# ---------------------------------- Main ----------------------------------- #

if __name__ == "__main__":
    # Small shapes consistent with the module: x is (batch, seq_len, num_features).
    batch = 8
    seq_len = 4
    num_features = 16
    hidden_size = 32
    num_layers = 2
    num_classes = 8

    key = jax.random.PRNGKey(0)
    x = jax.random.normal(key, (batch, seq_len, num_features), jnp.float32)

    model = NIDSGRUPallas(num_features, hidden_size, num_layers, num_classes,
                          use_bn=True, dropout=0.5)

    out = jax.block_until_ready(model(x))
    ref = jax.block_until_ready(model.reference(x))

    assert out.shape == (batch, num_classes), out.shape
    # Kernel casts dot inputs to bf16 (single-pass MXU); reference keeps f32
    # activations, so allow a small bf16-level tolerance.
    err = float(jnp.max(jnp.abs(out - ref)))
    assert err < 5e-2, f"max abs err {err}"

    print("KERNEL_OK")
</pallas_src>

<mosaic_0001>
module attributes {stable_mosaic.version = 11 : i64} {
  func.func @kernel(%arg0: i32, %arg1: memref<8x64xf32, #tpu.memory_space<vmem>>, %arg2: memref<16x96xbf16, #tpu.memory_space<vmem>>, %arg3: memref<32x96xbf16, #tpu.memory_space<vmem>>, %arg4: memref<2x96xf32, #tpu.memory_space<vmem>>, %arg5: memref<32x96xbf16, #tpu.memory_space<vmem>>, %arg6: memref<32x96xbf16, #tpu.memory_space<vmem>>, %arg7: memref<2x96xf32, #tpu.memory_space<vmem>>, %arg8: memref<2x32xf32, #tpu.memory_space<vmem>>, %arg9: memref<32x128xbf16, #tpu.memory_space<vmem>>, %arg10: memref<1x128xf32, #tpu.memory_space<vmem>>, %arg11: memref<128x128xbf16, #tpu.memory_space<vmem>>, %arg12: memref<1x128xf32, #tpu.memory_space<vmem>>, %arg13: memref<8x128xf32, #tpu.memory_space<vmem>>) attributes {dimension_semantics = [#tpu.dimension_semantics<parallel>], iteration_bounds = array<i64: 1>, scalar_prefetch = 0 : i64, scratch_operands = 0 : i64, tpu.core_type = #tpu.core_type<tc>, window_params = [{transform_indices = @transform_0, window_bounds = array<i64: 8, 64>}, {pipeline_mode = #tpu.pipeline_mode<synchronous>, transform_indices = @transform_1, window_bounds = array<i64: 16, 96>}, {pipeline_mode = #tpu.pipeline_mode<synchronous>, transform_indices = @transform_2, window_bounds = array<i64: 32, 96>}, {pipeline_mode = #tpu.pipeline_mode<synchronous>, transform_indices = @transform_3, window_bounds = array<i64: 2, 96>}, {pipeline_mode = #tpu.pipeline_mode<synchronous>, transform_indices = @transform_4, window_bounds = array<i64: 32, 96>}, {pipeline_mode = #tpu.pipeline_mode<synchronous>, transform_indices = @transform_5, window_bounds = array<i64: 32, 96>}, {pipeline_mode = #tpu.pipeline_mode<synchronous>, transform_indices = @transform_6, window_bounds = array<i64: 2, 96>}, {pipeline_mode = #tpu.pipeline_mode<synchronous>, transform_indices = @transform_7, window_bounds = array<i64: 2, 32>}, {pipeline_mode = #tpu.pipeline_mode<synchronous>, transform_indices = @transform_8, window_bounds = array<i64: 32, 128>}, {pipeline_mode = #tpu.pipeline_mode<synchronous>, transform_indices = @transform_9, window_bounds = array<i64: 1, 128>}, {pipeline_mode = #tpu.pipeline_mode<synchronous>, transform_indices = @transform_10, window_bounds = array<i64: 128, 128>}, {pipeline_mode = #tpu.pipeline_mode<synchronous>, transform_indices = @transform_11, window_bounds = array<i64: 1, 128>}, {transform_indices = @transform_12, window_bounds = array<i64: 8, 128>}]} {
    %c0 = arith.constant 0 : index
    %c0_0 = arith.constant 0 : index
    %0 = vector.load %arg1[%c0, %c0_0] : memref<8x64xf32, #tpu.memory_space<vmem>>, vector<8x64xf32>
    %1 = vector.extract_strided_slice %0 {offsets = [0, 0], sizes = [8, 16], strides = [1, 1]} : vector<8x64xf32> to vector<8x16xf32>
    %2 = vector.extract_strided_slice %0 {offsets = [0, 16], sizes = [8, 16], strides = [1, 1]} : vector<8x64xf32> to vector<8x16xf32>
    %3 = vector.extract_strided_slice %0 {offsets = [0, 32], sizes = [8, 16], strides = [1, 1]} : vector<8x64xf32> to vector<8x16xf32>
    %4 = vector.extract_strided_slice %0 {offsets = [0, 48], sizes = [8, 16], strides = [1, 1]} : vector<8x64xf32> to vector<8x16xf32>
    %5 = tpu.concatenate %1, %2, %3, %4 in 0 : vector<8x16xf32>, vector<8x16xf32>, vector<8x16xf32>, vector<8x16xf32> -> vector<32x16xf32>
    %6 = arith.truncf %5 : vector<32x16xf32> to vector<32x16xbf16>
    %c0_1 = arith.constant 0 : index
    %c0_2 = arith.constant 0 : index
    %7 = vector.load %arg2[%c0_1, %c0_2] : memref<16x96xbf16, #tpu.memory_space<vmem>>, vector<16x96xbf16>
    %cst = arith.constant dense<0.000000e+00> : vector<32x96xf32>
    %8 = tpu.matmul %6, %7, %cst {dimension_numbers = #tpu.dot_dimension_numbers<[1], [0], [0], [1], [0, 0, 1, 1], [], []>} : vector<32x16xbf16>, vector<16x96xbf16>, vector<32x96xf32> -> vector<32x96xf32>
    %c0_3 = arith.constant 0 : index
    %c0_4 = arith.constant 0 : index
    %9 = vector.load %arg4[%c0_3, %c0_4] : memref<2x96xf32, #tpu.memory_space<vmem>>, vector<1x96xf32>
    %10 = vector.broadcast %9 : vector<1x96xf32> to vector<32x96xf32>
    %11 = arith.addf %8, %10 : vector<32x96xf32>
    %c0_5 = arith.constant 0 : index
    %c0_6 = arith.constant 0 : index
    %12 = vector.load %arg3[%c0_5, %c0_6] : memref<32x96xbf16, #tpu.memory_space<vmem>>, vector<32x96xbf16>
    %c1 = arith.constant 1 : index
    %c0_7 = arith.constant 0 : index
    %13 = vector.load %arg4[%c1, %c0_7] : memref<2x96xf32, #tpu.memory_space<vmem>>, vector<1x96xf32>
    %14 = vector.shape_cast %13 : vector<1x96xf32> to vector<1x96xf32>
    %15 = vector.broadcast %14 : vector<1x96xf32> to vector<8x96xf32>
    %cst_8 = arith.constant 0.000000e+00 : f32
    %16 = vector.broadcast %cst_8 : f32 to vector<8x32xf32>
    %17 = vector.extract_strided_slice %11 {offsets = [0, 0], sizes = [8, 96], strides = [1, 1]} : vector<32x96xf32> to vector<8x96xf32>
    %18 = arith.truncf %16 : vector<8x32xf32> to vector<8x32xbf16>
    %cst_9 = arith.constant dense<0.000000e+00> : vector<8x96xf32>
    %19 = tpu.matmul %18, %12, %cst_9 {dimension_numbers = #tpu.dot_dimension_numbers<[1], [0], [0], [1], [0, 0, 1, 1], [], []>} : vector<8x32xbf16>, vector<32x96xbf16>, vector<8x96xf32> -> vector<8x96xf32>
    %20 = arith.addf %19, %15 : vector<8x96xf32>
    %21 = vector.extract_strided_slice %17 {offsets = [0, 0], sizes = [8, 64], strides = [1, 1]} : vector<8x96xf32> to vector<8x64xf32>
    %22 = vector.extract_strided_slice %20 {offsets = [0, 0], sizes = [8, 64], strides = [1, 1]} : vector<8x96xf32> to vector<8x64xf32>
    %23 = arith.addf %21, %22 : vector<8x64xf32>
    %24 = arith.negf %23 : vector<8x64xf32>
    %25 = math.exp %24 : vector<8x64xf32>
    %cst_10 = arith.constant 1.000000e+00 : f32
    %26 = vector.broadcast %cst_10 : f32 to vector<8x64xf32>
    %27 = arith.addf %26, %25 : vector<8x64xf32>
    %28 = arith.divf %26, %27 : vector<8x64xf32>
    %29 = vector.extract_strided_slice %28 {offsets = [0, 0], sizes = [8, 32], strides = [1, 1]} : vector<8x64xf32> to vector<8x32xf32>
    %30 = vector.extract_strided_slice %28 {offsets = [0, 32], sizes = [8, 32], strides = [1, 1]} : vector<8x64xf32> to vector<8x32xf32>
    %31 = vector.extract_strided_slice %17 {offsets = [0, 64], sizes = [8, 32], strides = [1, 1]} : vector<8x96xf32> to vector<8x32xf32>
    %32 = vector.extract_strided_slice %20 {offsets = [0, 64], sizes = [8, 32], strides = [1, 1]} : vector<8x96xf32> to vector<8x32xf32>
    %33 = arith.mulf %29, %32 : vector<8x32xf32>
    %34 = arith.addf %31, %33 : vector<8x32xf32>
    %35 = math.tanh %34 : vector<8x32xf32>
    %cst_11 = arith.constant 1.000000e+00 : f32
    %36 = vector.broadcast %cst_11 : f32 to vector<8x32xf32>
    %37 = arith.subf %36, %30 : vector<8x32xf32>
    %38 = arith.mulf %37, %35 : vector<8x32xf32>
    %39 = arith.mulf %30, %16 : vector<8x32xf32>
    %40 = arith.addf %38, %39 : vector<8x32xf32>
    %41 = vector.extract_strided_slice %11 {offsets = [8, 0], sizes = [8, 96], strides = [1, 1]} : vector<32x96xf32> to vector<8x96xf32>
    %42 = arith.truncf %40 : vector<8x32xf32> to vector<8x32xbf16>
    %cst_12 = arith.constant dense<0.000000e+00> : vector<8x96xf32>
    %43 = tpu.matmul %42, %12, %cst_12 {dimension_numbers = #tpu.dot_dimension_numbers<[1], [0], [0], [1], [0, 0, 1, 1], [], []>} : vector<8x32xbf16>, vector<32x96xbf16>, vector<8x96xf32> -> vector<8x96xf32>
    %44 = arith.addf %43, %15 : vector<8x96xf32>
    %45 = vector.extract_strided_slice %41 {offsets = [0, 0], sizes = [8, 64], strides = [1, 1]} : vector<8x96xf32> to vector<8x64xf32>
    %46 = vector.extract_strided_slice %44 {offsets = [0, 0], sizes = [8, 64], strides = [1, 1]} : vector<8x96xf32> to vector<8x64xf32>
    %47 = arith.addf %45, %46 : vector<8x64xf32>
    %48 = arith.negf %47 : vector<8x64xf32>
    %49 = math.exp %48 : vector<8x64xf32>
    %cst_13 = arith.constant 1.000000e+00 : f32
    %50 = vector.broadcast %cst_13 : f32 to vector<8x64xf32>
    %51 = arith.addf %50, %49 : vector<8x64xf32>
    %52 = arith.divf %50, %51 : vector<8x64xf32>
    %53 = vector.extract_strided_slice %52 {offsets = [0, 0], sizes = [8, 32], strides = [1, 1]} : vector<8x64xf32> to vector<8x32xf32>
    %54 = vector.extract_strided_slice %52 {offsets = [0, 32], sizes = [8, 32], strides = [1, 1]} : vector<8x64xf32> to vector<8x32xf32>
    %55 = vector.extract_strided_slice %41 {offsets = [0, 64], sizes = [8, 32], strides = [1, 1]} : vector<8x96xf32> to vector<8x32xf32>
    %56 = vector.extract_strided_slice %44 {offsets = [0, 64], sizes = [8, 32], strides = [1, 1]} : vector<8x96xf32> to vector<8x32xf32>
    %57 = arith.mulf %53, %56 : vector<8x32xf32>
    %58 = arith.addf %55, %57 : vector<8x32xf32>
    %59 = math.tanh %58 : vector<8x32xf32>
    %cst_14 = arith.constant 1.000000e+00 : f32
    %60 = vector.broadcast %cst_14 : f32 to vector<8x32xf32>
    %61 = arith.subf %60, %54 : vector<8x32xf32>
    %62 = arith.mulf %61, %59 : vector<8x32xf32>
    %63 = arith.mulf %54, %40 : vector<8x32xf32>
    %64 = arith.addf %62, %63 : vector<8x32xf32>
    %65 = vector.extract_strided_slice %11 {offsets = [16, 0], sizes = [8, 96], strides = [1, 1]} : vector<32x96xf32> to vector<8x96xf32>
    %66 = arith.truncf %64 : vector<8x32xf32> to vector<8x32xbf16>
    %cst_15 = arith.constant dense<0.000000e+00> : vector<8x96xf32>
    %67 = tpu.matmul %66, %12, %cst_15 {dimension_numbers = #tpu.dot_dimension_numbers<[1], [0], [0], [1], [0, 0, 1, 1], [], []>} : vector<8x32xbf16>, vector<32x96xbf16>, vector<8x96xf32> -> vector<8x96xf32>
    %68 = arith.addf %67, %15 : vector<8x96xf32>
    %69 = vector.extract_strided_slice %65 {offsets = [0, 0], sizes = [8, 64], strides = [1, 1]} : vector<8x96xf32> to vector<8x64xf32>
    %70 = vector.extract_strided_slice %68 {offsets = [0, 0], sizes = [8, 64], strides = [1, 1]} : vector<8x96xf32> to vector<8x64xf32>
    %71 = arith.addf %69, %70 : vector<8x64xf32>
    %72 = arith.negf %71 : vector<8x64xf32>
    %73 = math.exp %72 : vector<8x64xf32>
    %cst_16 = arith.constant 1.000000e+00 : f32
    %74 = vector.broadcast %cst_16 : f32 to vector<8x64xf32>
    %75 = arith.addf %74, %73 : vector<8x64xf32>
    %76 = arith.divf %74, %75 : vector<8x64xf32>
    %77 = vector.extract_strided_slice %76 {offsets = [0, 0], sizes = [8, 32], strides = [1, 1]} : vector<8x64xf32> to vector<8x32xf32>
    %78 = vector.extract_strided_slice %76 {offsets = [0, 32], sizes = [8, 32], strides = [1, 1]} : vector<8x64xf32> to vector<8x32xf32>
    %79 = vector.extract_strided_slice %65 {offsets = [0, 64], sizes = [8, 32], strides = [1, 1]} : vector<8x96xf32> to vector<8x32xf32>
    %80 = vector.extract_strided_slice %68 {offsets = [0, 64], sizes = [8, 32], strides = [1, 1]} : vector<8x96xf32> to vector<8x32xf32>
    %81 = arith.mulf %77, %80 : vector<8x32xf32>
    %82 = arith.addf %79, %81 : vector<8x32xf32>
    %83 = math.tanh %82 : vector<8x32xf32>
    %cst_17 = arith.constant 1.000000e+00 : f32
    %84 = vector.broadcast %cst_17 : f32 to vector<8x32xf32>
    %85 = arith.subf %84, %78 : vector<8x32xf32>
    %86 = arith.mulf %85, %83 : vector<8x32xf32>
    %87 = arith.mulf %78, %64 : vector<8x32xf32>
    %88 = arith.addf %86, %87 : vector<8x32xf32>
    %89 = vector.extract_strided_slice %11 {offsets = [24, 0], sizes = [8, 96], strides = [1, 1]} : vector<32x96xf32> to vector<8x96xf32>
    %90 = arith.truncf %88 : vector<8x32xf32> to vector<8x32xbf16>
    %cst_18 = arith.constant dense<0.000000e+00> : vector<8x96xf32>
    %91 = tpu.matmul %90, %12, %cst_18 {dimension_numbers = #tpu.dot_dimension_numbers<[1], [0], [0], [1], [0, 0, 1, 1], [], []>} : vector<8x32xbf16>, vector<32x96xbf16>, vector<8x96xf32> -> vector<8x96xf32>
    %92 = arith.addf %91, %15 : vector<8x96xf32>
    %93 = vector.extract_strided_slice %89 {offsets = [0, 0], sizes = [8, 64], strides = [1, 1]} : vector<8x96xf32> to vector<8x64xf32>
    %94 = vector.extract_strided_slice %92 {offsets = [0, 0], sizes = [8, 64], strides = [1, 1]} : vector<8x96xf32> to vector<8x64xf32>
    %95 = arith.addf %93, %94 : vector<8x64xf32>
    %96 = arith.negf %95 : vector<8x64xf32>
    %97 = math.exp %96 : vector<8x64xf32>
    %cst_19 = arith.constant 1.000000e+00 : f32
    %98 = vector.broadcast %cst_19 : f32 to vector<8x64xf32>
    %99 = arith.addf %98, %97 : vector<8x64xf32>
    %100 = arith.divf %98, %99 : vector<8x64xf32>
    %101 = vector.extract_strided_slice %100 {offsets = [0, 0], sizes = [8, 32], strides = [1, 1]} : vector<8x64xf32> to vector<8x32xf32>
    %102 = vector.extract_strided_slice %100 {offsets = [0, 32], sizes = [8, 32], strides = [1, 1]} : vector<8x64xf32> to vector<8x32xf32>
    %103 = vector.extract_strided_slice %89 {offsets = [0, 64], sizes = [8, 32], strides = [1, 1]} : vector<8x96xf32> to vector<8x32xf32>
    %104 = vector.extract_strided_slice %92 {offsets = [0, 64], sizes = [8, 32], strides = [1, 1]} : vector<8x96xf32> to vector<8x32xf32>
    %105 = arith.mulf %101, %104 : vector<8x32xf32>
    %106 = arith.addf %103, %105 : vector<8x32xf32>
    %107 = math.tanh %106 : vector<8x32xf32>
    %cst_20 = arith.constant 1.000000e+00 : f32
    %108 = vector.broadcast %cst_20 : f32 to vector<8x32xf32>
    %109 = arith.subf %108, %102 : vector<8x32xf32>
    %110 = arith.mulf %109, %107 : vector<8x32xf32>
    %111 = arith.mulf %102, %88 : vector<8x32xf32>
    %112 = arith.addf %110, %111 : vector<8x32xf32>
    %113 = tpu.concatenate %40, %64, %88, %112 in 0 : vector<8x32xf32>, vector<8x32xf32>, vector<8x32xf32>, vector<8x32xf32> -> vector<32x32xf32>
    %114 = arith.truncf %113 : vector<32x32xf32> to vector<32x32xbf16>
    %c0_21 = arith.constant 0 : index
    %c0_22 = arith.constant 0 : index
    %115 = vector.load %arg5[%c0_21, %c0_22] : memref<32x96xbf16, #tpu.memory_space<vmem>>, vector<32x96xbf16>
    %cst_23 = arith.constant dense<0.000000e+00> : vector<32x96xf32>
    %116 = tpu.matmul %114, %115, %cst_23 {dimension_numbers = #tpu.dot_dimension_numbers<[1], [0], [0], [1], [0, 0, 1, 1], [], []>} : vector<32x32xbf16>, vector<32x96xbf16>, vector<32x96xf32> -> vector<32x96xf32>
    %c0_24 = arith.constant 0 : index
    %c0_25 = arith.constant 0 : index
    %117 = vector.load %arg7[%c0_24, %c0_25] : memref<2x96xf32, #tpu.memory_space<vmem>>, vector<1x96xf32>
    %118 = vector.broadcast %117 : vector<1x96xf32> to vector<32x96xf32>
    %119 = arith.addf %116, %118 : vector<32x96xf32>
    %c0_26 = arith.constant 0 : index
    %c0_27 = arith.constant 0 : index
    %120 = vector.load %arg6[%c0_26, %c0_27] : memref<32x96xbf16, #tpu.memory_space<vmem>>, vector<32x96xbf16>
    %c1_28 = arith.constant 1 : index
    %c0_29 = arith.constant 0 : index
    %121 = vector.load %arg7[%c1_28, %c0_29] : memref<2x96xf32, #tpu.memory_space<vmem>>, vector<1x96xf32>
    %122 = vector.shape_cast %121 : vector<1x96xf32> to vector<1x96xf32>
    %123 = vector.broadcast %122 : vector<1x96xf32> to vector<8x96xf32>
    %cst_30 = arith.constant 0.000000e+00 : f32
    %124 = vector.broadcast %cst_30 : f32 to vector<8x32xf32>
    %125 = vector.extract_strided_slice %119 {offsets = [0, 0], sizes = [8, 96], strides = [1, 1]} : vector<32x96xf32> to vector<8x96xf32>
    %126 = arith.truncf %124 : vector<8x32xf32> to vector<8x32xbf16>
    %cst_31 = arith.constant dense<0.000000e+00> : vector<8x96xf32>
    %127 = tpu.matmul %126, %120, %cst_31 {dimension_numbers = #tpu.dot_dimension_numbers<[1], [0], [0], [1], [0, 0, 1, 1], [], []>} : vector<8x32xbf16>, vector<32x96xbf16>, vector<8x96xf32> -> vector<8x96xf32>
    %128 = arith.addf %127, %123 : vector<8x96xf32>
    %129 = vector.extract_strided_slice %125 {offsets = [0, 0], sizes = [8, 64], strides = [1, 1]} : vector<8x96xf32> to vector<8x64xf32>
    %130 = vector.extract_strided_slice %128 {offsets = [0, 0], sizes = [8, 64], strides = [1, 1]} : vector<8x96xf32> to vector<8x64xf32>
    %131 = arith.addf %129, %130 : vector<8x64xf32>
    %132 = arith.negf %131 : vector<8x64xf32>
    %133 = math.exp %132 : vector<8x64xf32>
    %cst_32 = arith.constant 1.000000e+00 : f32
    %134 = vector.broadcast %cst_32 : f32 to vector<8x64xf32>
    %135 = arith.addf %134, %133 : vector<8x64xf32>
    %136 = arith.divf %134, %135 : vector<8x64xf32>
    %137 = vector.extract_strided_slice %136 {offsets = [0, 0], sizes = [8, 32], strides = [1, 1]} : vector<8x64xf32> to vector<8x32xf32>
    %138 = vector.extract_strided_slice %136 {offsets = [0, 32], sizes = [8, 32], strides = [1, 1]} : vector<8x64xf32> to vector<8x32xf32>
    %139 = vector.extract_strided_slice %125 {offsets = [0, 64], sizes = [8, 32], strides = [1, 1]} : vector<8x96xf32> to vector<8x32xf32>
    %140 = vector.extract_strided_slice %128 {offsets = [0, 64], sizes = [8, 32], strides = [1, 1]} : vector<8x96xf32> to vector<8x32xf32>
    %141 = arith.mulf %137, %140 : vector<8x32xf32>
    %142 = arith.addf %139, %141 : vector<8x32xf32>
    %143 = math.tanh %142 : vector<8x32xf32>
    %cst_33 = arith.constant 1.000000e+00 : f32
    %144 = vector.broadcast %cst_33 : f32 to vector<8x32xf32>
    %145 = arith.subf %144, %138 : vector<8x32xf32>
    %146 = arith.mulf %145, %143 : vector<8x32xf32>
    %147 = arith.mulf %138, %124 : vector<8x32xf32>
    %148 = arith.addf %146, %147 : vector<8x32xf32>
    %149 = vector.extract_strided_slice %119 {offsets = [8, 0], sizes = [8, 96], strides = [1, 1]} : vector<32x96xf32> to vector<8x96xf32>
    %150 = arith.truncf %148 : vector<8x32xf32> to vector<8x32xbf16>
    %cst_34 = arith.constant dense<0.000000e+00> : vector<8x96xf32>
    %151 = tpu.matmul %150, %120, %cst_34 {dimension_numbers = #tpu.dot_dimension_numbers<[1], [0], [0], [1], [0, 0, 1, 1], [], []>} : vector<8x32xbf16>, vector<32x96xbf16>, vector<8x96xf32> -> vector<8x96xf32>
    %152 = arith.addf %151, %123 : vector<8x96xf32>
    %153 = vector.extract_strided_slice %149 {offsets = [0, 0], sizes = [8, 64], strides = [1, 1]} : vector<8x96xf32> to vector<8x64xf32>
    %154 = vector.extract_strided_slice %152 {offsets = [0, 0], sizes = [8, 64], strides = [1, 1]} : vector<8x96xf32> to vector<8x64xf32>
    %155 = arith.addf %153, %154 : vector<8x64xf32>
    %156 = arith.negf %155 : vector<8x64xf32>
    %157 = math.exp %156 : vector<8x64xf32>
    %cst_35 = arith.constant 1.000000e+00 : f32
    %158 = vector.broadcast %cst_35 : f32 to vector<8x64xf32>
    %159 = arith.addf %158, %157 : vector<8x64xf32>
    %160 = arith.divf %158, %159 : vector<8x64xf32>
    %161 = vector.extract_strided_slice %160 {offsets = [0, 0], sizes = [8, 32], strides = [1, 1]} : vector<8x64xf32> to vector<8x32xf32>
    %162 = vector.extract_strided_slice %160 {offsets = [0, 32], sizes = [8, 32], strides = [1, 1]} : vector<8x64xf32> to vector<8x32xf32>
    %163 = vector.extract_strided_slice %149 {offsets = [0, 64], sizes = [8, 32], strides = [1, 1]} : vector<8x96xf32> to vector<8x32xf32>
    %164 = vector.extract_strided_slice %152 {offsets = [0, 64], sizes = [8, 32], strides = [1, 1]} : vector<8x96xf32> to vector<8x32xf32>
    %165 = arith.mulf %161, %164 : vector<8x32xf32>
    %166 = arith.addf %163, %165 : vector<8x32xf32>
    %167 = math.tanh %166 : vector<8x32xf32>
    %cst_36 = arith.constant 1.000000e+00 : f32
    %168 = vector.broadcast %cst_36 : f32 to vector<8x32xf32>
    %169 = arith.subf %168, %162 : vector<8x32xf32>
    %170 = arith.mulf %169, %167 : vector<8x32xf32>
    %171 = arith.mulf %162, %148 : vector<8x32xf32>
    %172 = arith.addf %170, %171 : vector<8x32xf32>
    %173 = vector.extract_strided_slice %119 {offsets = [16, 0], sizes = [8, 96], strides = [1, 1]} : vector<32x96xf32> to vector<8x96xf32>
    %174 = arith.truncf %172 : vector<8x32xf32> to vector<8x32xbf16>
    %cst_37 = arith.constant dense<0.000000e+00> : vector<8x96xf32>
    %175 = tpu.matmul %174, %120, %cst_37 {dimension_numbers = #tpu.dot_dimension_numbers<[1], [0], [0], [1], [0, 0, 1, 1], [], []>} : vector<8x32xbf16>, vector<32x96xbf16>, vector<8x96xf32> -> vector<8x96xf32>
    %176 = arith.addf %175, %123 : vector<8x96xf32>
    %177 = vector.extract_strided_slice %173 {offsets = [0, 0], sizes = [8, 64], strides = [1, 1]} : vector<8x96xf32> to vector<8x64xf32>
    %178 = vector.extract_strided_slice %176 {offsets = [0, 0], sizes = [8, 64], strides = [1, 1]} : vector<8x96xf32> to vector<8x64xf32>
    %179 = arith.addf %177, %178 : vector<8x64xf32>
    %180 = arith.negf %179 : vector<8x64xf32>
    %181 = math.exp %180 : vector<8x64xf32>
    %cst_38 = arith.constant 1.000000e+00 : f32
    %182 = vector.broadcast %cst_38 : f32 to vector<8x64xf32>
    %183 = arith.addf %182, %181 : vector<8x64xf32>
    %184 = arith.divf %182, %183 : vector<8x64xf32>
    %185 = vector.extract_strided_slice %184 {offsets = [0, 0], sizes = [8, 32], strides = [1, 1]} : vector<8x64xf32> to vector<8x32xf32>
    %186 = vector.extract_strided_slice %184 {offsets = [0, 32], sizes = [8, 32], strides = [1, 1]} : vector<8x64xf32> to vector<8x32xf32>
    %187 = vector.extract_strided_slice %173 {offsets = [0, 64], sizes = [8, 32], strides = [1, 1]} : vector<8x96xf32> to vector<8x32xf32>
    %188 = vector.extract_strided_slice %176 {offsets = [0, 64], sizes = [8, 32], strides = [1, 1]} : vector<8x96xf32> to vector<8x32xf32>
    %189 = arith.mulf %185, %188 : vector<8x32xf32>
    %190 = arith.addf %187, %189 : vector<8x32xf32>
    %191 = math.tanh %190 : vector<8x32xf32>
    %cst_39 = arith.constant 1.000000e+00 : f32
    %192 = vector.broadcast %cst_39 : f32 to vector<8x32xf32>
    %193 = arith.subf %192, %186 : vector<8x32xf32>
    %194 = arith.mulf %193, %191 : vector<8x32xf32>
    %195 = arith.mulf %186, %172 : vector<8x32xf32>
    %196 = arith.addf %194, %195 : vector<8x32xf32>
    %197 = vector.extract_strided_slice %119 {offsets = [24, 0], sizes = [8, 96], strides = [1, 1]} : vector<32x96xf32> to vector<8x96xf32>
    %198 = arith.truncf %196 : vector<8x32xf32> to vector<8x32xbf16>
    %cst_40 = arith.constant dense<0.000000e+00> : vector<8x96xf32>
    %199 = tpu.matmul %198, %120, %cst_40 {dimension_numbers = #tpu.dot_dimension_numbers<[1], [0], [0], [1], [0, 0, 1, 1], [], []>} : vector<8x32xbf16>, vector<32x96xbf16>, vector<8x96xf32> -> vector<8x96xf32>
    %200 = arith.addf %199, %123 : vector<8x96xf32>
    %201 = vector.extract_strided_slice %197 {offsets = [0, 0], sizes = [8, 64], strides = [1, 1]} : vector<8x96xf32> to vector<8x64xf32>
    %202 = vector.extract_strided_slice %200 {offsets = [0, 0], sizes = [8, 64], strides = [1, 1]} : vector<8x96xf32> to vector<8x64xf32>
    %203 = arith.addf %201, %202 : vector<8x64xf32>
    %204 = arith.negf %203 : vector<8x64xf32>
    %205 = math.exp %204 : vector<8x64xf32>
    %cst_41 = arith.constant 1.000000e+00 : f32
    %206 = vector.broadcast %cst_41 : f32 to vector<8x64xf32>
    %207 = arith.addf %206, %205 : vector<8x64xf32>
    %208 = arith.divf %206, %207 : vector<8x64xf32>
    %209 = vector.extract_strided_slice %208 {offsets = [0, 0], sizes = [8, 32], strides = [1, 1]} : vector<8x64xf32> to vector<8x32xf32>
    %210 = vector.extract_strided_slice %208 {offsets = [0, 32], sizes = [8, 32], strides = [1, 1]} : vector<8x64xf32> to vector<8x32xf32>
    %211 = vector.extract_strided_slice %197 {offsets = [0, 64], sizes = [8, 32], strides = [1, 1]} : vector<8x96xf32> to vector<8x32xf32>
    %212 = vector.extract_strided_slice %200 {offsets = [0, 64], sizes = [8, 32], strides = [1, 1]} : vector<8x96xf32> to vector<8x32xf32>
    %213 = arith.mulf %209, %212 : vector<8x32xf32>
    %214 = arith.addf %211, %213 : vector<8x32xf32>
    %215 = math.tanh %214 : vector<8x32xf32>
    %cst_42 = arith.constant 1.000000e+00 : f32
    %216 = vector.broadcast %cst_42 : f32 to vector<8x32xf32>
    %217 = arith.subf %216, %210 : vector<8x32xf32>
    %218 = arith.mulf %217, %215 : vector<8x32xf32>
    %219 = arith.mulf %210, %196 : vector<8x32xf32>
    %220 = arith.addf %218, %219 : vector<8x32xf32>
    %c0_43 = arith.constant 0 : index
    %c0_44 = arith.constant 0 : index
    %221 = vector.load %arg8[%c0_43, %c0_44] : memref<2x32xf32, #tpu.memory_space<vmem>>, vector<1x32xf32>
    %222 = vector.broadcast %221 : vector<1x32xf32> to vector<8x32xf32>
    %223 = arith.mulf %220, %222 : vector<8x32xf32>
    %c1_45 = arith.constant 1 : index
    %c0_46 = arith.constant 0 : index
    %224 = vector.load %arg8[%c1_45, %c0_46] : memref<2x32xf32, #tpu.memory_space<vmem>>, vector<1x32xf32>
    %225 = vector.broadcast %224 : vector<1x32xf32> to vector<8x32xf32>
    %226 = arith.addf %223, %225 : vector<8x32xf32>
    %227 = arith.truncf %226 : vector<8x32xf32> to vector<8x32xbf16>
    %c0_47 = arith.constant 0 : index
    %c0_48 = arith.constant 0 : index
    %228 = vector.load %arg9[%c0_47, %c0_48] : memref<32x128xbf16, #tpu.memory_space<vmem>>, vector<32x128xbf16>
    %cst_49 = arith.constant dense<0.000000e+00> : vector<8x128xf32>
    %229 = tpu.matmul %227, %228, %cst_49 {dimension_numbers = #tpu.dot_dimension_numbers<[1], [0], [0], [1], [0, 0, 1, 1], [], []>} : vector<8x32xbf16>, vector<32x128xbf16>, vector<8x128xf32> -> vector<8x128xf32>
    %c0_50 = arith.constant 0 : index
    %c0_51 = arith.constant 0 : index
    %230 = vector.load %arg10[%c0_50, %c0_51] : memref<1x128xf32, #tpu.memory_space<vmem>>, vector<1x128xf32>
    %231 = vector.broadcast %230 : vector<1x128xf32> to vector<8x128xf32>
    %232 = arith.addf %229, %231 : vector<8x128xf32>
    %233 = arith.truncf %232 : vector<8x128xf32> to vector<8x128xbf16>
    %c0_52 = arith.constant 0 : index
    %c0_53 = arith.constant 0 : index
    %234 = vector.load %arg11[%c0_52, %c0_53] : memref<128x128xbf16, #tpu.memory_space<vmem>>, vector<128x128xbf16>
    %cst_54 = arith.constant dense<0.000000e+00> : vector<8x128xf32>
    %235 = tpu.matmul %233, %234, %cst_54 {dimension_numbers = #tpu.dot_dimension_numbers<[1], [0], [0], [1], [0, 0, 1, 1], [], []>} : vector<8x128xbf16>, vector<128x128xbf16>, vector<8x128xf32> -> vector<8x128xf32>
    %c0_55 = arith.constant 0 : index
    %c0_56 = arith.constant 0 : index
    %236 = vector.load %arg12[%c0_55, %c0_56] : memref<1x128xf32, #tpu.memory_space<vmem>>, vector<1x128xf32>
    %237 = vector.broadcast %236 : vector<1x128xf32> to vector<8x128xf32>
    %238 = arith.addf %235, %237 : vector<8x128xf32>
    %c0_57 = arith.constant 0 : index
    %c0_58 = arith.constant 0 : index
    %239 = vector.load %arg13[%c0_57, %c0_58] : memref<8x128xf32, #tpu.memory_space<vmem>>, vector<8x128xf32>
    tpu.vector_store %arg13[%c0_57, %c0_58], %238 {strides = array<i32>} : memref<8x128xf32, #tpu.memory_space<vmem>>, vector<8x128xf32>,
    return
  }
  func.func @transform_0(%arg0: i32) -> (i32, i32) {
    %c0_i32 = arith.constant 0 : i32
    %c0_i32_0 = arith.constant 0 : i32
    return %arg0, %c0_i32 : i32, i32
  }
  func.func @transform_1(%arg0: i32) -> (i32, i32) {
    %c0_i32 = arith.constant 0 : i32
    %c0_i32_0 = arith.constant 0 : i32
    %c0_i32_1 = arith.constant 0 : i32
    return %c0_i32, %c0_i32_0 : i32, i32
  }
  func.func @transform_2(%arg0: i32) -> (i32, i32) {
    %c0_i32 = arith.constant 0 : i32
    %c0_i32_0 = arith.constant 0 : i32
    %c0_i32_1 = arith.constant 0 : i32
    return %c0_i32, %c0_i32_0 : i32, i32
  }
  func.func @transform_3(%arg0: i32) -> (i32, i32) {
    %c0_i32 = arith.constant 0 : i32
    %c0_i32_0 = arith.constant 0 : i32
    %c0_i32_1 = arith.constant 0 : i32
    return %c0_i32, %c0_i32_0 : i32, i32
  }
  func.func @transform_4(%arg0: i32) -> (i32, i32) {
    %c0_i32 = arith.constant 0 : i32
    %c0_i32_0 = arith.constant 0 : i32
    %c0_i32_1 = arith.constant 0 : i32
    return %c0_i32, %c0_i32_0 : i32, i32
  }
  func.func @transform_5(%arg0: i32) -> (i32, i32) {
    %c0_i32 = arith.constant 0 : i32
    %c0_i32_0 = arith.constant 0 : i32
    %c0_i32_1 = arith.constant 0 : i32
    return %c0_i32, %c0_i32_0 : i32, i32
  }
  func.func @transform_6(%arg0: i32) -> (i32, i32) {
    %c0_i32 = arith.constant 0 : i32
    %c0_i32_0 = arith.constant 0 : i32
    %c0_i32_1 = arith.constant 0 : i32
    return %c0_i32, %c0_i32_0 : i32, i32
  }
  func.func @transform_7(%arg0: i32) -> (i32, i32) {
    %c0_i32 = arith.constant 0 : i32
    %c0_i32_0 = arith.constant 0 : i32
    %c0_i32_1 = arith.constant 0 : i32
    return %c0_i32, %c0_i32_0 : i32, i32
  }
  func.func @transform_8(%arg0: i32) -> (i32, i32) {
    %c0_i32 = arith.constant 0 : i32
    %c0_i32_0 = arith.constant 0 : i32
    %c0_i32_1 = arith.constant 0 : i32
    return %c0_i32, %c0_i32_0 : i32, i32
  }
  func.func @transform_9(%arg0: i32) -> (i32, i32) {
    %c0_i32 = arith.constant 0 : i32
    %c0_i32_0 = arith.constant 0 : i32
    %c0_i32_1 = arith.constant 0 : i32
    return %c0_i32, %c0_i32_0 : i32, i32
  }
  func.func @transform_10(%arg0: i32) -> (i32, i32) {
    %c0_i32 = arith.constant 0 : i32
    %c0_i32_0 = arith.constant 0 : i32
    %c0_i32_1 = arith.constant 0 : i32
    return %c0_i32, %c0_i32_0 : i32, i32
  }
  func.func @transform_11(%arg0: i32) -> (i32, i32) {
    %c0_i32 = arith.constant 0 : i32
    %c0_i32_0 = arith.constant 0 : i32
    %c0_i32_1 = arith.constant 0 : i32
    return %c0_i32, %c0_i32_0 : i32, i32
  }
  func.func @transform_12(%arg0: i32) -> (i32, i32) {
    %c0_i32 = arith.constant 0 : i32
    %c0_i32_0 = arith.constant 0 : i32
    return %arg0, %c0_i32 : i32, i32
  }
}

</mosaic_0001>

<bundles_post_ra>
// kernel: _forward_impl.1
= control target key start
LH: loop header
LB: loop body
LE: loop exit
PB: predicated region body
PF: predicated region fallthrough
CT: control target
= control target key end

     0   :  { %17 = vsyncpa [#allocation3], 0  ;;  %s1892_s0 = inlined_call_operand.vmem [shape: f32[8,64], index: 0, kind: input, shape index: {}]   ;;  %s1893_s1 = inlined_call_operand.vmem [shape: bf16[16,96], index: 1, kind: input, shape index: {}]   ;;  %s1894_s2 = inlined_call_operand.hbm [shape: bf16[32,96], index: 2, kind: input, shape index: {}]   ;;  %s1895_s3 = inlined_call_operand.vmem [shape: f32[2,96], index: 3, kind: input, shape index: {}]   ;;  %s1896_s4 = inlined_call_operand.hbm [shape: bf16[32,96], index: 4, kind: input, shape index: {}]   ;;  %s1897_s5 = inlined_call_operand.hbm [shape: bf16[32,96], index: 5, kind: input, shape index: {}]   ;;  %s1898_s6 = inlined_call_operand.vmem [shape: f32[2,96], index: 6, kind: input, shape index: {}]   ;;  %s1899_s7 = inlined_call_operand.hbm [shape: f32[2,32], index: 7, kind: input, shape index: {}]   ;;  %s1900_s8 = inlined_call_operand.hbm [shape: bf16[32,128], index: 8, kind: input, shape index: {}]   ;;  %s1901_s9 = inlined_call_operand.vmem [shape: f32[1,128], index: 9, kind: input, shape index: {}]   ;;  %s1902_s10 = inlined_call_operand.vmem [shape: bf16[128,128], index: 10, kind: input, shape index: {}]   ;;  %s1903_s11 = inlined_call_operand.vmem [shape: f32[1,128], index: 11, kind: input, shape index: {}]   ;;  %s1904_s12 = inlined_call_operand.hbm [shape: f32[8,128], index: 12, kind: output, shape index: {}]  }
   0x1   :  { %18 = vsyncpa [#allocation6], 0 }
   0x2   :  { %19 = vsyncpa [#allocation9], 0 }
   0x3   :  { %20 = vsyncpa [#allocation4], 0  ;;  %s1524_s21 = smov [#allocation5]   ;;  %s1525_s23 = smov [#allocation8]  }
   0x4   :  { %s44_s22 = sshll.u32 %s1524_s21, 4  ;;  %s71_s24 = sshll.u32 %s1525_s23, 4  ;;  %s45_s22 = int_to_ptr.vmem [resolvable:$true] %s44_s22  ;;  %s72_s24 = int_to_ptr.vmem [resolvable:$true] %s71_s24 }
   0x5   :  { %s1384_s27 = scalar_lea.hbm %s1896_s4, 256 }
   0x6   :  { %p1385_p0 = scmp.ne.s32.totalorder %s1896_s4, %s1384_s27  ;;  %p1388_p1 = scmp.lt.u32.totalorder %s1384_s27, %s1896_s4 }
   0x8   :  { %p1390_p2 = pnand %p1388_p1, %p1385_p0 }
   0xa   :  { %1393 = shalt.err (!%p1390_p2)
}
   0xb   :  { %s1394_s14 = scalar_lea.vmem %s45_s22, 256  ;;  %p1399_p4 = scmp.lt.s32.totalorder %s45_s22, %s45_s22 }
   0xc   :  { %p1395_p3 = scmp.ne.s32.totalorder %s45_s22, %s1394_s14  ;;  %p1400_p5 = scmp.lt.s32.totalorder %s1394_s14, %s1394_s14 }
   0xe   :  { %p1401_p6 = por %p1400_p5, %p1399_p4 }
  0x10   :  { %p1402_p7 = pnand %p1401_p6, %p1395_p3 }
  0x12   :  { %1405 = shalt.err (!%p1402_p7)
}
  0x13   :  { %s1526_s15 = smov 64   ;;  %s1527_s16 = smov 4  }
  0x14   :  { %50 = dma.hbm_to_vmem [thread:$0]  %s1896_s4, 256, %s45_s22, [#allocation6], %s1526_s15, %s1526_s15, %s1527_s16  }
  0x15   :  { %s1406_s21 = scalar_lea.hbm %s1899_s7, 32 }
  0x16   :  { %p1407_p8 = scmp.ne.s32.totalorder %s1899_s7, %s1406_s21  ;;  %p1410_p9 = scmp.lt.u32.totalorder %s1406_s21, %s1899_s7 }
  0x18   :  { %p1412_p10 = pnand %p1410_p9, %p1407_p8 }
  0x1a   :  { %1415 = shalt.err (!%p1412_p10)
}
  0x1b   :  { %s1416_s28 = scalar_lea.vmem %s72_s24, 32  ;;  %p1421_p12 = scmp.lt.s32.totalorder %s72_s24, %s72_s24 }
  0x1c   :  { %p1417_p11 = scmp.ne.s32.totalorder %s72_s24, %s1416_s28  ;;  %p1422_p13 = scmp.lt.s32.totalorder %s1416_s28, %s1416_s28 }
  0x1e   :  { %p1423_p0 = por %p1422_p13, %p1421_p12 }
  0x20   :  { %p1424_p1 = pnand %p1423_p0, %p1417_p11 }
  0x22   :  { %1427 = shalt.err (!%p1424_p1)
}
  0x23   :  { %74 = dma.hbm_to_vmem [thread:$0]  %s1899_s7, 32, %s72_s24, [#allocation9]  }
  0x24   :  { %s1528_s29 = smov [#allocation2]   ;;  %s1529_s13 = smov [#allocation7]  }
  0x25   :  { %s30_s30 = sshll.u32 %s1528_s29, 4  ;;  %s56_s14 = sshll.u32 %s1529_s13, 4  ;;  %s31_s30 = int_to_ptr.vmem [resolvable:$true] %s30_s30  ;;  %s1631_s14 = int_to_ptr.vmem [resolvable:$true] %s56_s14 }
  0x26   :  { %s1428_s19 = scalar_lea.hbm %s1894_s2, 256 }
  0x27   :  { %p1429_p2 = scmp.ne.s32.totalorder %s1894_s2, %s1428_s19  ;;  %p1432_p3 = scmp.lt.u32.totalorder %s1428_s19, %s1894_s2 }
  0x29   :  { %p1434_p4 = pnand %p1432_p3, %p1429_p2 }
  0x2b   :  { %1437 = shalt.err (!%p1434_p4)
}
  0x2c   :  { %s1438_s7 = scalar_lea.vmem %s31_s30, 256  ;;  %p1443_p6 = scmp.lt.s32.totalorder %s31_s30, %s31_s30 }
  0x2d   :  { %p1439_p5 = scmp.ne.s32.totalorder %s31_s30, %s1438_s7  ;;  %p1444_p7 = scmp.lt.s32.totalorder %s1438_s7, %s1438_s7 }
  0x2f   :  { %p1445_p8 = por %p1444_p7, %p1443_p6 }
  0x31   :  { %p1446_p9 = pnand %p1445_p8, %p1439_p5 }
  0x33   :  { %1449 = shalt.err (!%p1446_p9)
}
  0x34   :  { %36 = dma.hbm_to_vmem [thread:$0]  %s1894_s2, 256, %s31_s30, [#allocation3], %s1526_s15, %s1526_s15, %s1527_s16  }
  0x35   :  { %s1450_s4 = scalar_lea.hbm %s1897_s5, 256 }
  0x36   :  { %p1451_p10 = scmp.ne.s32.totalorder %s1897_s5, %s1450_s4  ;;  %p1454_p11 = scmp.lt.u32.totalorder %s1450_s4, %s1897_s5 }
  0x38   :  { %p1456_p12 = pnand %p1454_p11, %p1451_p10 }
  0x3a   :  { %1459 = shalt.err (!%p1456_p12)
}
  0x3b   :  { %s1460_s18 = scalar_lea.vmem %s1631_s14, 256  ;;  %p1465_p0 = scmp.lt.s32.totalorder %s1631_s14, %s1631_s14 }
  0x3c   :  { %p1461_p13 = scmp.ne.s32.totalorder %s1631_s14, %s1460_s18  ;;  %p1466_p1 = scmp.lt.s32.totalorder %s1460_s18, %s1460_s18 }
  0x3e   :  { %p1467_p2 = por %p1466_p1, %p1465_p0 }
  0x40   :  { %p1468_p3 = pnand %p1467_p2, %p1461_p13 }
  0x42   :  { %1471 = shalt.err (!%p1468_p3)
}
  0x43   :  { %62 = dma.hbm_to_vmem [thread:$0]  %s1897_s5, 256, %s1631_s14, [#allocation6], %s1526_s15, %s1526_s15, %s1527_s16  }
  0x44   :  { %s1530_s19 = smov [#allocation10]   ;;  %s1472_s25 = scalar_lea.hbm %s1900_s8, 256 }
  0x45   :  { %s80_s20 = sshll.u32 %s1530_s19, 4  ;;  %p1473_p4 = scmp.ne.s32.totalorder %s1900_s8, %s1472_s25  ;;  %s81_s20 = int_to_ptr.vmem [resolvable:$true] %s80_s20 }
  0x46   :  { %p1476_p5 = scmp.lt.u32.totalorder %s1472_s25, %s1900_s8 }
  0x48   :  { %p1478_p6 = pnand %p1476_p5, %p1473_p4 }
  0x4a   :  { %1481 = shalt.err (!%p1478_p6)
}
  0x4b   :  { %s1482_s28 = scalar_lea.vmem %s81_s20, 256  ;;  %p1487_p8 = scmp.lt.s32.totalorder %s81_s20, %s81_s20 }
  0x4c   :  { %p1483_p7 = scmp.ne.s32.totalorder %s81_s20, %s1482_s28  ;;  %p1488_p9 = scmp.lt.s32.totalorder %s1482_s28, %s1482_s28 }
  0x4e   :  { %p1489_p10 = por %p1488_p9, %p1487_p8 }
  0x50   :  { %p1490_p11 = pnand %p1489_p10, %p1483_p7 }
  0x52   :  { %1493 = shalt.err (!%p1490_p11)
}
  0x53   :  { %86 = dma.hbm_to_vmem [thread:$0]  %s1900_s8, 256, %s81_s20, [#allocation9], %s1526_s15, %s1526_s15, %s1527_s16  }
  0x54   :  { %1516 = dma.done.wait [#allocation3], 256  }
  0x55   :  { %1517 = vsyncadd [#allocation3], 4294967040 }
  0x56   :  { %1518 = dma.done.wait [#allocation6], 512  }
  0x57   :  { %1519 = vsyncadd [#allocation6], 4294966784 }
  0x58   :  { %1520 = dma.done.wait [#allocation9], 288  }
  0x59   :  { %1521 = vsyncadd [#allocation9], 4294967008  ;;  %v109_v0 = vld [vmem:[%s1892_s0] sm:$0xff]  ;;  %s1531_s29 = smov 112   ;;  %s1532_s13 = smov 80   ;;  %v1534_v2 = vmov 0.0  }
  0x5a   :  { %111 = vrot.lane.b32.xlu0 %v109_v0, %s1531_s29  ;;  %117 = vrot.lane.b32.xlu1 %v109_v0, %s1532_s13  ;;  %v1319_v1 = vld [vmem:[%s1893_s1] sm:$0xff]   ;;  %s1533_s8 = smov 96   ;;  %vm135_vm0 = vcmask 130048   ;;  %v1691_v7 = vld [vmem:[#allocation2] sm:$0xff]   ;;  %v1694_v9 = vld [vmem:[#allocation2 + $0x8] sm:$0xff]   ;;  %vm1535_vm1 = vmmov 0  }
  0x5b   :  { %1198 = vmatprep.subr.bf16.mxu0 %v1319_v1  ;;  %v1536_v10 = vmov 0   ;;  %v1111_v11 = vld [vmem:[%s1895_s3] ss:$0 sm:$0xff]  ;;  %v1718_v19 = vld [vmem:[%s1895_s3 + $0x1] ss:$0 sm:$0xff]  ;;  %vm212_vm2 = vcmask 261120  }
  0x5c   :  { %1199 = vmatpush3.bf16.msra.mxu0 %v1319_v1  ;;  %s1538_s16 = smov [#allocation11]  }
  0x5d   :  { %1204 = vmatprep.subr.bf16.mxu0 %v1534_v2  ;;  %s1100_s2 = sshll.u32 %s1538_s16, 4  ;;  %s1101_s2 = int_to_ptr.vmem [resolvable:$true] %s1100_s2 }
  0x5e   :  { %114 = vrot.lane.b32.xlu0 %v109_v0, %s1533_s8  ;;  %p1499_p13 = scmp.lt.s32.totalorder %s1101_s2, %s1101_s2 }
  0xcc   :  { %v112_v3 = vpop.permute.xlu0 %111  ;;  %v118_v5 = vpop.permute.xlu1 %117 }
  0xcd   :  { %v120_v4 = vpack.c.bf16 %v112_v3, %v109_v0 }
  0xcf   :  { %1200 = vmatprep.mubr.msk.bf16.mxu0 %vm135_vm0, %v120_v4 }
  0xd0   :  { %v115_v6 = vpop.permute.xlu0 %114 }
  0xd1   :  { %v121_v8 = vpack.c.bf16 %v118_v5, %v115_v6 }
  0xd3   :  { %1201 = vmatmul.mubr.msk.bf16.vlgmr.msra.gmra.mrb[0].mxu0 %vm135_vm0, %v121_v8 }
  0xd4   :  { %1205 = vmatpush3.bf16.msra.mxu0 %v1691_v7  ;;  %1208 = vmatprep.mubr.msk.bf16.mxu0 %vm1535_vm1, %v1534_v2 }
  0xd5   :  { %1206 = vmatprep.subr.bf16.mxu0 %v1534_v2 }
  0xd8   :  { %1207 = vmatpush3.bf16.msra.mxu0 %v1694_v9 }
  0xd9   :  { %1212 = vmatprep.subr.bf16.mxu0 %v1534_v2 }
  0xdb   :  { %1209 = vmatmul.mubr.bf16.vlgmr.msra.gmra.mrb[4].mxu0 %v1536_v10 }
  0xdc   :  { %1213 = vmatpush3.bf16.msra.mxu0 %v1691_v7  ;;  %1216 = vmatprep.mubr.msk.bf16.mxu0 %vm1535_vm1, %v1534_v2 }
  0xdd   :  { %1214 = vmatprep.subr.bf16.mxu0 %v1534_v2 }
  0xe0   :  { %1215 = vmatpush3.bf16.msra.mxu0 %v1694_v9 }
  0xe1   :  { %1220 = vmatprep.subr.bf16.mxu0 %v1534_v2 }
 0x1a6   :  { %v1202_v12 = vpop.f32.mrb[0].mxu0 }
 0x1a7   :  { %v1711_v13 = vadd.f32 %v1202_v12, %v1111_v11  ;;  %v176_v14 = vpop.f32.mrb[1].mxu0 }
 0x1a8   :  { %v1203_v15 = vpop.f32.mrb[2].mxu0  ;;  %v177_v25 = vadd.f32 %v1111_v11, %v176_v14 }
 0x1a9   :  { %v1713_v16 = vadd.f32 %v1203_v15, %v1111_v11  ;;  %v179_v17 = vpop.f32.mrb[3].mxu0 }
 0x1aa   :  { %v180_v18 = vadd.f32 %v1111_v11, %v179_v17 }
 0x1ae   :  { %v250_v20 = vpop.f32.mrb[4].mxu0 }
 0x1af   :  { %v251_v21 = vadd.f32 %v1718_v19, %v250_v20  ;;  %v1210_v22 = vpop.f32.mrb[5].mxu0 }
 0x1b0   :  { %v253_v23 = vpop.f32.mrb[6].mxu0 }
 0x1b1   :  { %264 = vrot.lane.b32.xlu1 %v251_v21, %s1526_s15  ;;  %v1211_v24 = vpop.f32.mrb[7].mxu0  ;;  %v256_v26 = vadd.f32 %v251_v21, %v177_v25 }
 0x1b3   :  { %v1118_v27 = vmul.f32 -1.442695, %v256_v26 }
 0x1b5   :  { %1336 = vpow2.f32 %v1118_v27 }
 0x1bf   :  { %v1337_v28 = vpop.eup %1336 }
 0x1c0   :  { %v260_v29 = vadd.f32 1.0, %v1337_v28 }
 0x1c2   :  { %1338 = vrcp.f32 %v260_v29 }
 0x1cc   :  { %v1339_v30 = vpop.eup %1338 }
 0x1cd   :  { %v274_v36 = vsub.f32 1.0, %v1339_v30  ;;  %v280_v38 = vmul.f32 0.0, %v1339_v30 }
 0x223   :  { %v265_v31 = vpop.permute.xlu1 %264 }
 0x224   :  { %v267_v32 = vmul.f32 %v1339_v30, %v265_v31 }
 0x226   :  { %269 = vrot.lane.b32.xlu0 %v267_v32, %s1526_s15 }
 0x298   :  { %v270_v33 = vpop.permute.xlu0 %269 }
 0x299   :  { %v272_v34 = vadd.f32 %v270_v33, %v177_v25 }
 0x29b   :  { %1340 = vtanh.f32 %v272_v34 }
 0x2a5   :  { %v1341_v35 = vpop.eup %1340 }
 0x2a6   :  { %276 = vrot.lane.b32.xlu1 %v1341_v35, %s1533_s8 }
 0x318   :  { %v277_v37 = vpop.permute.xlu1 %276 }
 0x319   :  { %v279_v39 = vmul.f32 %v277_v37, %v274_v36 }
 0x31b   :  { %v1724_v40 = vadd.f32 %v280_v38, %v279_v39 }
 0x31d   :  { %v282_v41 = vpack.c.bf16 %v1724_v40, %v1724_v40 }
 0x31f   :  { %284 = vrot.lane.b32.xlu0 %v282_v41, %s1533_s8 }
 0x391   :  { %v285_v42 = vpop.permute.xlu0 %284 }
 0x392   :  { %1217 = vmatmul.mubr.msk.bf16.vlgmr.msra.gmra.mrb[8].mxu0 %vm212_vm2, %v285_v42 }
 0x393   :  { %1221 = vmatpush3.bf16.msra.mxu0 %v1691_v7  ;;  %1224 = vmatprep.mubr.msk.bf16.mxu0 %vm1535_vm1, %v1534_v2 }
 0x394   :  { %1222 = vmatprep.subr.bf16.mxu0 %v1534_v2 }
 0x397   :  { %1223 = vmatpush3.bf16.msra.mxu0 %v1694_v9 }
 0x398   :  { %1228 = vmatprep.subr.bf16.mxu0 %v1534_v2 }
 0x465   :  { %v323_v43 = vpop.f32.mrb[8].mxu0 }
 0x466   :  { %v324_v44 = vadd.f32 %v1718_v19, %v323_v43  ;;  %v1218_v45 = vpop.f32.mrb[9].mxu0  ;;  %v1767_v43 = vld [vmem:[#allocation7] sm:$0xff]  }
 0x467   :  { %v326_v46 = vpop.f32.mrb[10].mxu0  ;;  %v1325_v45 = vld [vmem:[#allocation5 + $0x8] sm:$0xff]  }
 0x468   :  { %337 = vrot.lane.b32.xlu1 %v324_v44, %s1526_s15  ;;  %v1219_v47 = vpop.f32.mrb[11].mxu0  ;;  %v329_v48 = vadd.f32 %v324_v44, %v180_v18  ;;  %v1324_v44 = vld [vmem:[#allocation5] sm:$0xff]   ;;  %v1770_v46 = vld [vmem:[#allocation7 + $0x8] sm:$0xff]  }
 0x469   :  { %1236 = vmatprep.subr.bf16.mxu1 %v1324_v44 }
 0x46a   :  { %v1120_v49 = vmul.f32 -1.442695, %v329_v48  ;;  %1237 = vmatpush3.bf16.msra.mxu1 %v1324_v44 }
 0x46b   :  { %1238 = vmatprep.subr.bf16.mxu1 %v1325_v45 }
 0x46c   :  { %1342 = vpow2.f32 %v1120_v49 }
 0x46e   :  { %1239 = vmatpush3.bf16.msra.mxu1 %v1325_v45 }
 0x46f   :  { %1252 = vmatprep.subr.bf16.mxu1 %v1534_v2 }
 0x476   :  { %v1343_v50 = vpop.eup %1342 }
 0x477   :  { %v333_v51 = vadd.f32 1.0, %v1343_v50 }
 0x479   :  { %1344 = vrcp.f32 %v333_v51 }
 0x483   :  { %v1345_v52 = vpop.eup %1344 }
 0x484   :  { %v347_v58 = vsub.f32 1.0, %v1345_v52  ;;  %v353_v60 = vmul.f32 %v1345_v52, %v1724_v40 }
 0x4da   :  { %v338_v53 = vpop.permute.xlu1 %337 }
 0x4db   :  { %v340_v54 = vmul.f32 %v1345_v52, %v338_v53 }
 0x4dd   :  { %342 = vrot.lane.b32.xlu0 %v340_v54, %s1526_s15 }
 0x54f   :  { %v343_v55 = vpop.permute.xlu0 %342 }
 0x550   :  { %v345_v56 = vadd.f32 %v343_v55, %v180_v18 }
 0x552   :  { %1346 = vtanh.f32 %v345_v56 }
 0x55c   :  { %v1347_v57 = vpop.eup %1346 }
 0x55d   :  { %349 = vrot.lane.b32.xlu1 %v1347_v57, %s1533_s8 }
 0x5cf   :  { %v350_v59 = vpop.permute.xlu1 %349 }
 0x5d0   :  { %v352_v61 = vmul.f32 %v350_v59, %v347_v58  ;;  %v1125_v58 = vld [vmem:[%s1898_s6] ss:$0 sm:$0xff] }
 0x5d2   :  { %v354_v62 = vadd.f32 %v353_v60, %v352_v61 }
 0x5d4   :  { %v355_v63 = vpack.c.bf16 %v354_v62, %v354_v62  ;;  %v501_v39 = vpack.c.bf16 %v354_v62, %v1724_v40 }
 0x5d6   :  { %357 = vrot.lane.b32.xlu0 %v355_v63, %s1533_s8 }
 0x648   :  { %v358_v0 = vpop.permute.xlu0 %357 }
 0x649   :  { %1225 = vmatmul.mubr.msk.bf16.vlgmr.msra.gmra.mrb[12].mxu0 %vm212_vm2, %v358_v0 }
 0x64a   :  { %1229 = vmatpush3.bf16.msra.mxu0 %v1691_v7  ;;  %1232 = vmatprep.mubr.msk.bf16.mxu0 %vm1535_vm1, %v1534_v2 }
 0x64b   :  { %1230 = vmatprep.subr.bf16.mxu0 %v1534_v2 }
 0x64e   :  { %1231 = vmatpush3.bf16.msra.mxu0 %v1694_v9 }
 0x64f   :  { %1244 = vmatprep.subr.bf16.mxu0 %v1534_v2 }
 0x71c   :  { %v396_v1 = vpop.f32.mrb[12].mxu0 }
 0x71d   :  { %v397_v3 = vadd.f32 %v1718_v19, %v396_v1  ;;  %v1226_v4 = vpop.f32.mrb[13].mxu0 }
 0x71e   :  { %v399_v5 = vpop.f32.mrb[14].mxu0 }
 0x71f   :  { %410 = vrot.lane.b32.xlu1 %v397_v3, %s1526_s15  ;;  %v1227_v6 = vpop.f32.mrb[15].mxu0  ;;  %v402_v8 = vadd.f32 %v397_v3, %v1711_v13 }
 0x721   :  { %v1122_v7 = vmul.f32 -1.442695, %v402_v8 }
 0x723   :  { %1348 = vpow2.f32 %v1122_v7 }
 0x72d   :  { %v1349_v11 = vpop.eup %1348 }
 0x72e   :  { %v406_v12 = vadd.f32 1.0, %v1349_v11 }
 0x730   :  { %1350 = vrcp.f32 %v406_v12 }
 0x73a   :  { %v1351_v14 = vpop.eup %1350 }
 0x73b   :  { %v420_v21 = vsub.f32 1.0, %v1351_v14  ;;  %v426_v23 = vmul.f32 %v1351_v14, %v354_v62 }
 0x791   :  { %v411_v15 = vpop.permute.xlu1 %410 }
 0x792   :  { %v413_v9 = vmul.f32 %v1351_v14, %v411_v15 }
 0x794   :  { %415 = vrot.lane.b32.xlu0 %v413_v9, %s1526_s15 }
 0x806   :  { %v416_v17 = vpop.permute.xlu0 %415 }
 0x807   :  { %v418_v18 = vadd.f32 %v416_v17, %v1711_v13 }
 0x809   :  { %1352 = vtanh.f32 %v418_v18 }
 0x813   :  { %v1353_v20 = vpop.eup %1352 }
 0x814   :  { %422 = vrot.lane.b32.xlu1 %v1353_v20, %s1533_s8 }
 0x886   :  { %v423_v22 = vpop.permute.xlu1 %422 }
 0x887   :  { %v425_v24 = vmul.f32 %v423_v22, %v420_v21 }
 0x889   :  { %v427_v25 = vadd.f32 %v426_v23, %v425_v24 }
 0x88b   :  { %v428_v26 = vpack.c.bf16 %v427_v25, %v427_v25 }
 0x88d   :  { %430 = vrot.lane.b32.xlu0 %v428_v26, %s1533_s8 }
 0x8ff   :  { %v431_v27 = vpop.permute.xlu0 %430 }
 0x900   :  { %1233 = vmatmul.mubr.msk.bf16.vlgmr.msra.gmra.mrb[16].mxu0 %vm212_vm2, %v431_v27 }
 0x901   :  { %1248 = vmatprep.mubr.msk.bf16.mxu0 %vm1535_vm1, %v1534_v2  ;;  %1245 = vmatpush3.bf16.msra.mxu0 %v1767_v43 }
 0x902   :  { %1246 = vmatprep.subr.bf16.mxu0 %v1534_v2 }
 0x905   :  { %1247 = vmatpush3.bf16.msra.mxu0 %v1770_v46 }
 0x906   :  { %1260 = vmatprep.subr.bf16.mxu0 %v1534_v2 }
 0x908   :  { %1249 = vmatmul.mubr.bf16.vlgmr.msra.gmra.mrb[20].mxu0 %v1536_v10  ;;  %v1788_v10 = vld [vmem:[%s1898_s6 + $0x1] ss:$0 sm:$0xff]  ;;  %s1537_s6 = smov 32  }
 0x909   :  { %1261 = vmatpush3.bf16.msra.mxu0 %v1767_v43  ;;  %1264 = vmatprep.mubr.msk.bf16.mxu0 %vm1535_vm1, %v1534_v2 }
 0x90a   :  { %1262 = vmatprep.subr.bf16.mxu0 %v1534_v2 }
 0x90d   :  { %1263 = vmatpush3.bf16.msra.mxu0 %v1770_v46 }
 0x90e   :  { %1276 = vmatprep.subr.bf16.mxu0 %v1534_v2 }
 0x9d3   :  { %v469_v28 = vpop.f32.mrb[16].mxu0 }
 0x9d4   :  { %v470_v13 = vadd.f32 %v1718_v19, %v469_v28  ;;  %v1234_v29 = vpop.f32.mrb[17].mxu0 }
 0x9d5   :  { %v472_v30 = vpop.f32.mrb[18].mxu0 }
 0x9d6   :  { %483 = vrot.lane.b32.xlu1 %v470_v13, %s1526_s15  ;;  %v1235_v31 = vpop.f32.mrb[19].mxu0  ;;  %v475_v32 = vadd.f32 %v470_v13, %v1713_v16 }
 0x9d8   :  { %v1124_v33 = vmul.f32 -1.442695, %v475_v32 }
 0x9da   :  { %1354 = vpow2.f32 %v1124_v33 }
 0x9db   :  { %v640_v52 = vpop.f32.mrb[20].mxu0 }
 0x9dc   :  { %v641_v53 = vadd.f32 %v1788_v10, %v640_v52  ;;  %v1250_v54 = vpop.f32.mrb[21].mxu0 }
 0x9dd   :  { %v643_v55 = vpop.f32.mrb[22].mxu0 }
 0x9de   :  { %v1251_v56 = vpop.f32.mrb[23].mxu0 }
 0x9e4   :  { %v1355_v34 = vpop.eup %1354 }
 0x9e5   :  { %v479_v35 = vadd.f32 1.0, %v1355_v34 }
 0x9e7   :  { %1356 = vrcp.f32 %v479_v35 }
 0x9f1   :  { %v1357_v36 = vpop.eup %1356 }
 0x9f2   :  { %v499_v48 = vmul.f32 %v1357_v36, %v427_v25 }
 0xa48   :  { %v484_v37 = vpop.permute.xlu1 %483 }
 0xa49   :  { %v486_v38 = vmul.f32 %v1357_v36, %v484_v37 }
 0xa4b   :  { %488 = vrot.lane.b32.xlu0 %v486_v38, %s1526_s15 }
 0xa4f   :  { %514 = vrot.lane.b32.xlu0 %v501_v39, %s1533_s8 }
 0xa53   :  { %654 = vrot.lane.b32.xlu0 %v641_v53, %s1526_s15 }
 0xabd   :  { %v489_v19 = vpop.permute.xlu0 %488 }
 0xabe   :  { %v491_v41 = vadd.f32 %v489_v19, %v1713_v16  ;;  %v493_v16 = vsub.f32 1.0, %v1357_v36 }
 0xac0   :  { %1358 = vtanh.f32 %v491_v41 }
 0xac1   :  { %v515_v42 = vpop.permute.xlu0 %514 }
 0xac2   :  { %1240 = vmatprep.mubr.msk.bf16.mxu1 %vm212_vm2, %v515_v42 }
 0xac5   :  { %v655_v7 = vpop.permute.xlu0 %654 }
 0xaca   :  { %v1359_v40 = vpop.eup %1358 }
 0xacb   :  { %495 = vrot.lane.b32.xlu1 %v1359_v40, %s1533_s8 }
 0xb3d   :  { %v496_v47 = vpop.permute.xlu1 %495 }
 0xb3e   :  { %v498_v49 = vmul.f32 %v496_v47, %v493_v16 }
 0xb40   :  { %v500_v50 = vadd.f32 %v499_v48, %v498_v49 }
 0xb42   :  { %v502_v51 = vpack.c.bf16 %v500_v50, %v427_v25 }
 0xb44   :  { %516 = vrot.lane.b32.xlu1 %v502_v51, %s1533_s8 }
 0xbb6   :  { %v517_v57 = vpop.permute.xlu1 %516 }
 0xbb7   :  { %1241 = vmatmul.mubr.msk.bf16.vlgmr.msra.gmra.mrb[0].mxu1 %vm212_vm2, %v517_v57 }
 0xbb8   :  { %1253 = vmatpush3.bf16.msra.mxu1 %v1767_v43  ;;  %1256 = vmatprep.mubr.msk.bf16.mxu1 %vm1535_vm1, %v1534_v2 }
 0xbb9   :  { %1254 = vmatprep.subr.bf16.mxu1 %v1534_v2 }
 0xbbc   :  { %1255 = vmatpush3.bf16.msra.mxu1 %v1770_v46 }
 0xbbd   :  { %1268 = vmatprep.subr.bf16.mxu1 %v1534_v2 }
 0xc8a   :  { %v1242_v59 = vpop.f32.mrb[0].mxu1 }
 0xc8b   :  { %v1802_v60 = vadd.f32 %v1242_v59, %v1125_v58  ;;  %v570_v61 = vpop.f32.mrb[1].mxu1 }
 0xc8c   :  { %v571_v62 = vadd.f32 %v1125_v58, %v570_v61  ;;  %v1243_v63 = vpop.f32.mrb[2].mxu1 }
 0xc8d   :  { %v1804_v0 = vadd.f32 %v1243_v63, %v1125_v58  ;;  %v573_v1 = vpop.f32.mrb[3].mxu1 }
 0xc8e   :  { %v646_v3 = vadd.f32 %v641_v53, %v571_v62  ;;  %v574_v4 = vadd.f32 %v1125_v58, %v573_v1 }
 0xc90   :  { %v1133_v5 = vmul.f32 -1.442695, %v646_v3 }
 0xc92   :  { %1360 = vpow2.f32 %v1133_v5 }
 0xc9c   :  { %v1361_v6 = vpop.eup %1360 }
 0xc9d   :  { %v650_v8 = vadd.f32 1.0, %v1361_v6 }
 0xc9f   :  { %1362 = vrcp.f32 %v650_v8 }
 0xca9   :  { %v1363_v11 = vpop.eup %1362 }
 0xcaa   :  { %v657_v12 = vmul.f32 %v1363_v11, %v655_v7  ;;  %v664_v17 = vsub.f32 1.0, %v1363_v11  ;;  %v670_v20 = vmul.f32 0.0, %v1363_v11 }
 0xcac   :  { %659 = vrot.lane.b32.xlu1 %v657_v12, %s1526_s15 }
 0xd1e   :  { %v660_v14 = vpop.permute.xlu1 %659 }
 0xd1f   :  { %v662_v15 = vadd.f32 %v660_v14, %v571_v62 }
 0xd21   :  { %1364 = vtanh.f32 %v662_v15 }
 0xd2b   :  { %v1365_v9 = vpop.eup %1364 }
 0xd2c   :  { %666 = vrot.lane.b32.xlu0 %v1365_v9, %s1533_s8 }
 0xd9e   :  { %v667_v18 = vpop.permute.xlu0 %666 }
 0xd9f   :  { %v669_v21 = vmul.f32 %v667_v18, %v664_v17 }
 0xda1   :  { %v671_v22 = vadd.f32 %v670_v20, %v669_v21  ;;  %v1140_v20 = vld [vmem:[#allocation8] ss:$0 sm:$0xff] }
 0xda3   :  { %v672_v23 = vpack.c.bf16 %v671_v22, %v671_v22 }
 0xda5   :  { %674 = vrot.lane.b32.xlu1 %v672_v23, %s1533_s8 }
 0xe17   :  { %v675_v24 = vpop.permute.xlu1 %674 }
 0xe18   :  { %1257 = vmatmul.mubr.msk.bf16.vlgmr.msra.gmra.mrb[4].mxu1 %vm212_vm2, %v675_v24  ;;  %v1327_v24 = vld [vmem:[#allocation10 + $0x8] sm:$0xff]  }
 0xe19   :  { %1269 = vmatpush3.bf16.msra.mxu1 %v1767_v43  ;;  %1272 = vmatprep.mubr.msk.bf16.mxu1 %vm1535_vm1, %v1534_v2 }
 0xe1a   :  { %1270 = vmatprep.subr.bf16.mxu1 %v1534_v2 }
 0xe1d   :  { %1271 = vmatpush3.bf16.msra.mxu1 %v1770_v46 }
 0xe1e   :  { %1284 = vmatprep.subr.bf16.mxu1 %v1534_v2 }
 0xeeb   :  { %v713_v25 = vpop.f32.mrb[4].mxu1 }
 0xeec   :  { %v714_v26 = vadd.f32 %v1788_v10, %v713_v25  ;;  %v1258_v27 = vpop.f32.mrb[5].mxu1  ;;  %v1141_v25 = vld [vmem:[#allocation8 + $0x1] ss:$0 sm:$0xff] }
 0xeed   :  { %v716_v28 = vpop.f32.mrb[6].mxu1 }
 0xeee   :  { %727 = vrot.lane.b32.xlu0 %v714_v26, %s1526_s15  ;;  %v1259_v13 = vpop.f32.mrb[7].mxu1  ;;  %v719_v29 = vadd.f32 %v714_v26, %v574_v4  ;;  %v1328_v26 = vld [vmem:[%s1902_s10] sm:$0xff]  }
 0xef0   :  { %v1135_v30 = vmul.f32 -1.442695, %v719_v29 }
 0xef2   :  { %1366 = vpow2.f32 %v1135_v30 }
 0xefc   :  { %v1367_v31 = vpop.eup %1366 }
 0xefd   :  { %v723_v32 = vadd.f32 1.0, %v1367_v31 }
 0xeff   :  { %1368 = vrcp.f32 %v723_v32 }
 0xf09   :  { %v1369_v33 = vpop.eup %1368 }
 0xf0a   :  { %v737_v39 = vsub.f32 1.0, %v1369_v33  ;;  %v743_v41 = vmul.f32 %v1369_v33, %v671_v22  ;;  %v1326_v22 = vld [vmem:[#allocation10] sm:$0xff]  }
 0xf60   :  { %v728_v34 = vpop.permute.xlu0 %727 }
 0xf61   :  { %v730_v35 = vmul.f32 %v1369_v33, %v728_v34  ;;  %v1330_v33 = vld [vmem:[%s1902_s10 + $0x10] sm:$0xff]  }
 0xf63   :  { %732 = vrot.lane.b32.xlu1 %v730_v35, %s1526_s15 }
 0xfd5   :  { %v733_v36 = vpop.permute.xlu1 %732 }
 0xfd6   :  { %v735_v37 = vadd.f32 %v733_v36, %v574_v4  ;;  %v1331_v36 = vld [vmem:[%s1902_s10 + $0x18] sm:$0xff]  }
 0xfd8   :  { %1370 = vtanh.f32 %v735_v37 }
 0xfe2   :  { %v1371_v38 = vpop.eup %1370 }
 0xfe3   :  { %739 = vrot.lane.b32.xlu0 %v1371_v38, %s1533_s8  ;;  %v1332_v38 = vld [vmem:[%s1902_s10 + $0x20] sm:$0xff]  }
0x1055   :  { %v740_v19 = vpop.permute.xlu0 %739 }
0x1056   :  { %v742_v42 = vmul.f32 %v740_v19, %v737_v39  ;;  %v1333_v39 = vld [vmem:[%s1902_s10 + $0x28] sm:$0xff]   ;;  %v1334_v19 = vld [vmem:[%s1902_s10 + $0x30] sm:$0xff]  }
0x1058   :  { %v744_v43 = vadd.f32 %v743_v41, %v742_v42  ;;  %v1335_v42 = vld [vmem:[%s1902_s10 + $0x38] sm:$0xff]  }
0x105a   :  { %v745_v44 = vpack.c.bf16 %v744_v43, %v744_v43 }
0x105c   :  { %747 = vrot.lane.b32.xlu1 %v745_v44, %s1533_s8 }
0x10ce   :  { %v748_v45 = vpop.permute.xlu1 %747 }
0x10cf   :  { %1265 = vmatmul.mubr.msk.bf16.vlgmr.msra.gmra.mrb[24].mxu0 %vm212_vm2, %v748_v45 }
0x10d0   :  { %1280 = vmatprep.mubr.msk.bf16.mxu0 %vm1535_vm1, %v1534_v2  ;;  %1277 = vmatpush3.bf16.msra.mxu0 %v1326_v22 }
0x10d1   :  { %1278 = vmatprep.subr.bf16.mxu0 %v1534_v2 }
0x10d4   :  { %1279 = vmatpush3.bf16.msra.mxu0 %v1327_v24 }
0x11a2   :  { %v786_v46 = vpop.f32.mrb[24].mxu0 }
0x11a3   :  { %v787_v40 = vadd.f32 %v1788_v10, %v786_v46  ;;  %v1266_v16 = vpop.f32.mrb[25].mxu0 }
0x11a4   :  { %v789_v47 = vpop.f32.mrb[26].mxu0 }
0x11a5   :  { %800 = vrot.lane.b32.xlu0 %v787_v40, %s1526_s15  ;;  %v1267_v48 = vpop.f32.mrb[27].mxu0  ;;  %v792_v49 = vadd.f32 %v787_v40, %v1802_v60 }
0x11a7   :  { %v1137_v50 = vmul.f32 -1.442695, %v792_v49 }
0x11a9   :  { %1372 = vpow2.f32 %v1137_v50 }
0x11b3   :  { %v1373_v51 = vpop.eup %1372 }
0x11b4   :  { %v796_v52 = vadd.f32 1.0, %v1373_v51 }
0x11b6   :  { %1374 = vrcp.f32 %v796_v52 }
0x11c0   :  { %v1375_v53 = vpop.eup %1374 }
0x11c1   :  { %v810_v59 = vsub.f32 1.0, %v1375_v53  ;;  %v816_v62 = vmul.f32 %v1375_v53, %v744_v43  ;;  %v1142_v43 = vld [vmem:[%s1901_s9] ss:$0 sm:$0xff]  ;;  %s1494_s9 = scalar_lea.vmem %s1101_s2, 128 }
0x11c2   :  { %p1495_p12 = scmp.ne.s32.totalorder %s1101_s2, %s1494_s9  ;;  %p1500_p0 = scmp.lt.s32.totalorder %s1494_s9, %s1494_s9 }
0x11c4   :  { %p1501_p1 = por %p1500_p0, %p1499_p13 }
0x11c6   :  { %p1502_p2 = pnand %p1501_p1, %p1495_p12 }
0x1217   :  { %v801_v54 = vpop.permute.xlu0 %800 }
0x1218   :  { %v803_v55 = vmul.f32 %v1375_v53, %v801_v54 }
0x121a   :  { %805 = vrot.lane.b32.xlu1 %v803_v55, %s1526_s15 }
0x128c   :  { %v806_v56 = vpop.permute.xlu1 %805 }
0x128d   :  { %v808_v57 = vadd.f32 %v806_v56, %v1802_v60 }
0x128f   :  { %1376 = vtanh.f32 %v808_v57 }
0x1299   :  { %v1377_v58 = vpop.eup %1376 }
0x129a   :  { %812 = vrot.lane.b32.xlu0 %v1377_v58, %s1533_s8 }
0x130c   :  { %v813_v61 = vpop.permute.xlu0 %812 }
0x130d   :  { %v815_v63 = vmul.f32 %v813_v61, %v810_v59 }
0x130f   :  { %v817_v1 = vadd.f32 %v816_v62, %v815_v63 }
0x1311   :  { %v818_v3 = vpack.c.bf16 %v817_v1, %v817_v1 }
0x1313   :  { %820 = vrot.lane.b32.xlu1 %v818_v3, %s1533_s8 }
0x1385   :  { %v821_v4 = vpop.permute.xlu1 %820 }
0x1386   :  { %1273 = vmatmul.mubr.msk.bf16.vlgmr.msra.gmra.mrb[8].mxu1 %vm212_vm2, %v821_v4 }
0x1387   :  { %1300 = vmatprep.mubr.msk.bf16.mxu1 %vm1535_vm1, %v1534_v2  ;;  %1285 = vmatpush3.bf16.msra.mxu1 %v1328_v26 }
0x1388   :  { %1286 = vmatprep.subr.bf16.mxu1 %v1534_v2 }
0x1459   :  { %v859_v5 = vpop.f32.mrb[8].mxu1 }
0x145a   :  { %v860_v60 = vadd.f32 %v1788_v10, %v859_v5  ;;  %v1274_v6 = vpop.f32.mrb[9].mxu1 }
0x145b   :  { %v862_v8 = vpop.f32.mrb[10].mxu1 }
0x145c   :  { %873 = vrot.lane.b32.xlu0 %v860_v60, %s1526_s15  ;;  %v1275_v7 = vpop.f32.mrb[11].mxu1  ;;  %v865_v11 = vadd.f32 %v860_v60, %v1804_v0 }
0x145e   :  { %v1139_v12 = vmul.f32 -1.442695, %v865_v11 }
0x1460   :  { %1378 = vpow2.f32 %v1139_v12 }
0x146a   :  { %v1379_v14 = vpop.eup %1378 }
0x146b   :  { %v869_v15 = vadd.f32 1.0, %v1379_v14 }
0x146d   :  { %1380 = vrcp.f32 %v869_v15 }
0x1477   :  { %v1381_v9 = vpop.eup %1380 }
0x1478   :  { %v883_v27 = vsub.f32 1.0, %v1381_v9  ;;  %v889_v29 = vmul.f32 %v1381_v9, %v817_v1 }
0x14ce   :  { %v874_v17 = vpop.permute.xlu0 %873 }
0x14cf   :  { %v876_v18 = vmul.f32 %v1381_v9, %v874_v17 }
0x14d1   :  { %878 = vrot.lane.b32.xlu1 %v876_v18, %s1526_s15 }
0x14d5   :  { %897 = vrot.lane.b32.xlu1 %v1140_v20, %s1537_s6 }
0x1543   :  { %v879_v10 = vpop.permute.xlu1 %878 }
0x1544   :  { %v881_v21 = vadd.f32 %v879_v10, %v1804_v0  ;;  %v1329_v0 = vld [vmem:[%s1902_s10 + $0x8] sm:$0xff]  }
0x1545   :  { %1287 = vmatpush3.bf16.msra.mxu1 %v1329_v0 }
0x1546   :  { %1382 = vtanh.f32 %v881_v21  ;;  %1288 = vmatprep.subr.bf16.mxu1 %v1534_v2 }
0x1547   :  { %v898_v30 = vpop.permute.xlu1 %897 }
0x1549   :  { %1289 = vmatpush3.bf16.msra.mxu1 %v1330_v33 }
0x154a   :  { %1290 = vmatprep.subr.bf16.mxu1 %v1534_v2 }
0x154d   :  { %1291 = vmatpush3.bf16.msra.mxu1 %v1331_v36 }
0x154e   :  { %1292 = vmatprep.subr.bf16.mxu1 %v1534_v2 }
0x1550   :  { %v1383_v23 = vpop.eup %1382 }
0x1551   :  { %885 = vrot.lane.b32.xlu0 %v1383_v23, %s1533_s8  ;;  %1293 = vmatpush3.bf16.msra.mxu1 %v1332_v38 }
0x1552   :  { %1294 = vmatprep.subr.bf16.mxu1 %v1534_v2 }
0x1555   :  { %907 = vrot.lane.b32.xlu0 %v1141_v25, %s1537_s6  ;;  %1295 = vmatpush3.bf16.msra.mxu1 %v1333_v39 }
0x1556   :  { %1296 = vmatprep.subr.bf16.mxu1 %v1534_v2 }
0x1559   :  { %1297 = vmatpush3.bf16.msra.mxu1 %v1334_v19 }
0x155a   :  { %1298 = vmatprep.subr.bf16.mxu1 %v1534_v2  ;;  %v1146_v2 = vld [vmem:[%s1903_s11] ss:$0 sm:$0xff] }
0x155d   :  { %1299 = vmatpush3.bf16.msra.mxu1 %v1335_v42 }
0x15c3   :  { %v886_v28 = vpop.permute.xlu0 %885 }
0x15c4   :  { %v888_v13 = vmul.f32 %v886_v28, %v883_v27 }
0x15c6   :  { %v890_v31 = vadd.f32 %v889_v29, %v888_v13 }
0x15c7   :  { %v908_v32 = vpop.permute.xlu0 %907 }
0x15c8   :  { %v900_v34 = vmul.f32 %v898_v30, %v890_v31 }
0x15ca   :  { %v910_v35 = vadd.f32 %v908_v32, %v900_v34 }
0x15cc   :  { %v911_v37 = vpack.c.bf16 %v910_v35, %v910_v35 }
0x15ce   :  { %924 = vrot.lane.b32.xlu1 %v911_v37, %s1533_s8 }
0x1640   :  { %v925_v41 = vpop.permute.xlu1 %924 }
0x1641   :  { %1281 = vmatmul.mubr.msk.bf16.vlgmr.msra.gmra.mrb[28].mxu0 %vm212_vm2, %v925_v41 }
0x1714   :  { %v975_v44 = vpop.f32.mrb[28].mxu0 }
0x1715   :  { %v976_v45 = vadd.f32 %v1142_v43, %v975_v44  ;;  %v1282_v46 = vpop.f32.mrb[29].mxu0 }
0x1716   :  { %v978_v40 = vpop.f32.mrb[30].mxu0 }
0x1717   :  { %v981_v16 = vpack.c.bf16 %v976_v45, %v976_v45  ;;  %v1283_v47 = vpop.f32.mrb[31].mxu0 }
0x1719   :  { %1301 = vmatmul.mubr.bf16.vlgmr.msra.gmra.mrb[12].mxu1 %v981_v16 }
0x17ec   :  { %v1087_v48 = vpop.f32.mrb[12].mxu1 }
0x17ed   :  { %v1088_v49 = vadd.f32 %v1146_v2, %v1087_v48  ;;  %v1302_v50 = vpop.f32.mrb[13].mxu1 }
0x17ee   :  { %v1090_v51 = vpop.f32.mrb[14].mxu1 }
0x17ef   :  { %1093 = vst [vmem:[#allocation11] sm:$0xff] %v1088_v49  ;;  %v1303_v52 = vpop.f32.mrb[15].mxu1 }
0x17f0   :  { %1505 = shalt.err (!%p1502_p2)
}
0x17f1   :  { %s1506_s11 = scalar_lea.hbm %s1904_s12, 128 }
0x17f2   :  { %p1507_p3 = scmp.ne.s32.totalorder %s1904_s12, %s1506_s11  ;;  %p1510_p4 = scmp.lt.u32.totalorder %s1506_s11, %s1904_s12 }
0x17f4   :  { %p1512_p5 = pnand %p1510_p4, %p1507_p3 }
0x17f6   :  { %1515 = shalt.err (!%p1512_p5)
}
0x17f7   :  { %1103 = dma.vmem_to_hbm [thread:$0]  %s1101_s2, 128, %s1904_s12, [#allocation4]  }
0x17f8   :  { %1522 = dma.done.wait [#allocation4], 128  }
0x17f9   :  { %1523 = vsyncadd [#allocation4], 4294967168 }
0x17fa   :  { %1107 = vsyncpa [#allocation3], 1 }
0x17fb   :  { %1108 = vsyncpa [#allocation6], 1 }
0x17fc   :  { %1109 = vsyncpa [#allocation9], 1 }
0x17fd   :  { %1110 = vsyncpa [#allocation4], 1 }

</bundles_post_ra>
